<compile_context>
chip_gen: v5e
topology: v5e:2x2
jax: 0.10.0
libtpu: 0.0.40
codegen_flags: <defaults>
</compile_context>

<pallas_src>
import functools
import math

import jax
import jax.numpy as jnp
from jax.experimental import pallas as pl
from jax.experimental.pallas import tpu as pltpu


def _round_up(x, m):
    return (x + m - 1) // m * m


def _padded_vmem_bytes(shape, itemsize=4):
    """Approximate f32 VMEM bytes after (8, 128) tile padding of the last two dims."""
    if len(shape) == 1:
        return _round_up(shape[0], 128) * itemsize
    lead = 1
    for d in shape[:-2]:
        lead *= d
    return lead * _round_up(shape[-2], 8) * _round_up(shape[-1], 128) * itemsize


def _gnn_kernel(a_ref, h_ref, rs_ref, w_big_ref, cvin_ref, cvout_ref, bconst_ref,
                o_ref, *, step):
    """Fused, refolded GNNCell applied `step` times on a block of `Bb` graphs."""
    Bb, Np, H = h_ref.shape
    f32 = jnp.float32

    # ---- step-invariant values: read / build once, hoisted out of the unroll ----
    a = a_ref[...]                                       # (Bb, Np, 2*Np) = [A_in | A_out]
    w_big = w_big_ref[...]                               # (3H, 4H)

    # per-row bias: rowsum(A)-dependent C-term of the refold + constant gate biases
    rs = rs_ref[...]                                     # (Bb, Np, 2)
    bias = (rs[:, :, 0:1] * cvin_ref[...]
            + rs[:, :, 1:2] * cvout_ref[...]
            + bconst_ref[...])                           # (Bb, Np, 4H)
    bias = bias.reshape(Bb * Np, 4 * H)

    zeros_nh = jnp.zeros((Bb, Np, H), f32)               # zero block for blockdiag(h, h)

    h3 = h_ref[...].astype(f32)                          # (Bb, Np, H)
    h_flat = h3.reshape(Bb * Np, H)                      # free reshape (Np % 8 == 0)

    for _ in range(step):                                # static unroll; step is small
        # --- one batched adjacency matmul per graph: A @ [[h,0],[0,h]] ---
        e_top = jnp.concatenate([h3, zeros_nh], axis=2)            # (Bb, Np, 2H)
        e_bot = jnp.concatenate([zeros_nh, h3], axis=2)            # (Bb, Np, 2H)
        e = jnp.concatenate([e_top, e_bot], axis=1)                # (Bb, 2Np, 2H)
        t_cat = jnp.einsum('bnm,bmh->bnh', a, e,
                           preferred_element_type=f32)             # (Bb, Np, 2H)

        # --- single fused gate matmul: [A_in@h | A_out@h | h] @ W_big + bias ---
        lhs = jnp.concatenate([t_cat, h3], axis=2).reshape(Bb * Np, 3 * H)
        z = jnp.dot(lhs, w_big, preferred_element_type=f32) + bias  # (Bb*Np, 4H)

        rg = jax.nn.sigmoid(z[:, 0:H])                   # reset gate  (i_r + h_r)
        ig = jax.nn.sigmoid(z[:, H:2 * H])               # input gate  (i_i + h_i)
        ng = jnp.tanh(z[:, 2 * H:3 * H] + rg * z[:, 3 * H:4 * H])   # new gate
        h_flat = ng + ig * (h_flat - ng)
        h3 = h_flat.reshape(Bb, Np, H)

    o_ref[...] = h3.astype(o_ref.dtype)


def gnn_forward(A, hidden, w_ein, b_ein, w_eout, b_eout, b_iah, b_oah,
                w_ih_t, b_ih, w_hh_t, b_hh, *, step=1, block_b=None):
    """Pallas implementation of GNN.forward.

    Weight layouts (pre-transposed vs. the PyTorch module):
      w_ein, w_eout : (H, H)   == linear_edge_{in,out}.weight.T
      w_ih_t        : (2H, 3H) == w_ih.T
      w_hh_t        : (H, 3H)  == w_hh.T
    A: (B, N, 2N), hidden: (B, N, H)
    """
    B, N, H = hidden.shape
    assert A.shape == (B, N, 2 * N)
    f32 = jnp.float32
    out_dtype = hidden.dtype
    A = A.astype(f32)
    hidden = hidden.astype(f32)

    # ---- host-side algebraic refold (tiny, step-invariant) -----------------------
    # gi = input_in @ W_top + input_out @ W_bot + b_ih
    #    = (A_in@h) @ (w_ein@W_top) + (A_out@h) @ (w_eout@W_bot)
    #      + rowsum(A_in) (x) (b_ein@W_top) + rowsum(A_out) (x) (b_eout@W_bot)
    #      + (b_iah@W_top + b_oah@W_bot + b_ih)
    W_top = w_ih_t[:H].astype(f32)                       # multiplies input_in
    W_bot = w_ih_t[H:].astype(f32)                       # multiplies input_out
    M_cat = jnp.concatenate([w_ein.astype(f32) @ W_top,
                             w_eout.astype(f32) @ W_bot], axis=0)      # (2H, 3H)

    # Fused gate weight (3H, 4H):  [t_in | t_out | h] @ W_big ->
    #   cols 0:2H -> (i_r+h_r | i_i+h_i),  cols 2H:3H -> i_n,  cols 3H:4H -> h_n
    w_hh_t = w_hh_t.astype(f32)
    W_big = jnp.concatenate([
        jnp.concatenate([M_cat, jnp.zeros((2 * H, H), f32)], axis=1),
        jnp.concatenate([w_hh_t[:, :2 * H], jnp.zeros((H, H), f32),
                         w_hh_t[:, 2 * H:]], axis=1),
    ], axis=0)

    cvec_in = b_ein.astype(f32) @ W_top                  # (3H,)
    cvec_out = b_eout.astype(f32) @ W_bot
    cconst = (b_iah.astype(f32) @ W_top + b_oah.astype(f32) @ W_bot
              + b_ih.astype(f32))
    b_hh = b_hh.astype(f32)
    zH = jnp.zeros((H,), f32)
    cvec_in4 = jnp.concatenate([cvec_in, zH]).reshape(1, 4 * H)
    cvec_out4 = jnp.concatenate([cvec_out, zH]).reshape(1, 4 * H)
    bias_const4 = jnp.concatenate([cconst[:2 * H] + b_hh[:2 * H],
                                   cconst[2 * H:], b_hh[2 * H:]]).reshape(1, 4 * H)

    # adjacency row-sums (step-invariant; host-side so the kernel never lane-slices A)
    rs = jnp.stack([A[:, :, :N].sum(-1), A[:, :, N:].sum(-1)], axis=-1)   # (B, N, 2)

    # ---- node-axis padding to a sublane multiple (8) so in-kernel reshapes are free
    pad_n = (-N) % 8
    if pad_n:
        a_in = jnp.pad(A[:, :, :N], ((0, 0), (0, pad_n), (0, pad_n)))
        a_out = jnp.pad(A[:, :, N:], ((0, 0), (0, pad_n), (0, pad_n)))
        A = jnp.concatenate([a_in, a_out], axis=-1)
        hidden = jnp.pad(hidden, ((0, 0), (0, pad_n), (0, 0)))
        rs = jnp.pad(rs, ((0, 0), (0, pad_n), (0, 0)))
    Np = N + pad_n

    # ---- batch tile: fill the MXU M dimension; conservative VMEM budget for all gens
    if block_b is None:
        block_b = max(1, min(B, max(1, 2048 // Np)))

        def est_vmem(bb):
            io = (_padded_vmem_bytes((bb, Np, 2 * Np))
                  + 2 * _padded_vmem_bytes((bb, Np, H))
                  + _padded_vmem_bytes((bb, Np, 2)))
            work = (_padded_vmem_bytes((bb, 2 * Np, 2 * H))
                    + 5 * _padded_vmem_bytes((bb, Np, 4 * H)))
            return 2 * io + work         # double-buffered IO + in-flight temporaries

        while block_b > 1 and est_vmem(block_b) > 24 * 1024 * 1024:
            block_b = max(1, block_b // 2)

        # Megacore chips (2 TensorCores): keep >= 2 grid steps per core so each core's
        # input DMA still pipelines.  Single-TC chips (v5e/v6e) get no cap at all.
        try:
            kind = jax.devices()[0].device_kind.lower()
        except Exception:
            kind = ""
        if (("v4" in kind) or ("v5p" in kind) or ("v7" in kind)) and B >= 8:
            block_b = min(block_b, pl.cdiv(B, 4))

    grid = (pl.cdiv(B, block_b),)

    batch_map = lambda i: (i, 0, 0)
    fixed2d = lambda i: (0, 0)

    out = pl.pallas_call(
        functools.partial(_gnn_kernel, step=step),
        out_shape=jax.ShapeDtypeStruct((B, Np, H), out_dtype),
        grid_spec=pl.GridSpec(
            grid=grid,
            in_specs=[
                pl.BlockSpec((block_b, Np, 2 * Np), batch_map),   # A = [A_in | A_out]
                pl.BlockSpec((block_b, Np, H), batch_map),        # hidden
                pl.BlockSpec((block_b, Np, 2), batch_map),        # rowsums of A_in/A_out
                pl.BlockSpec((3 * H, 4 * H), fixed2d),            # W_big (fused gate w)
                pl.BlockSpec((1, 4 * H), fixed2d),                # cvec_in4
                pl.BlockSpec((1, 4 * H), fixed2d),                # cvec_out4
                pl.BlockSpec((1, 4 * H), fixed2d),                # bias_const4
            ],
            out_specs=pl.BlockSpec((block_b, Np, H), batch_map),
        ),
        compiler_params=pltpu.CompilerParams(
            dimension_semantics=("parallel",),
            vmem_limit_bytes=40 * 1024 * 1024),
    )(A, hidden, rs, W_big, cvec_in4, cvec_out4, bias_const4)

    return out[:, :N, :] if pad_n else out


if __name__ == "__main__":
    # module config: hidden_size=32, step=2 (exercises the fused in-kernel recurrence)
    hidden_size = 32
    B, N = 2, 16
    step = 2
    H, G = hidden_size, 3 * hidden_size

    key = jax.random.PRNGKey(0)
    keys = jax.random.split(key, 12)
    lim = 1.0 / math.sqrt(hidden_size)

    hidden = jax.random.normal(keys[0], (B, N, H), jnp.float32)
    # dense "adjacency" stand-in (SR-GNN uses row-normalized adjacency in [0, 1])
    A = jax.random.uniform(keys[1], (B, N, 2 * N), jnp.float32, 0.0, 1.0)

    # parameters, constructed directly in the kernel's (transposed) layout
    w_ein = jax.random.uniform(keys[2], (H, H), jnp.float32, -lim, lim)
    b_ein = jax.random.uniform(keys[3], (H,), jnp.float32, -lim, lim)
    w_eout = jax.random.uniform(keys[4], (H, H), jnp.float32, -lim, lim)
    b_eout = jax.random.uniform(keys[5], (H,), jnp.float32, -lim, lim)
    b_iah = jax.random.uniform(keys[6], (H,), jnp.float32, -lim, lim)
    b_oah = jax.random.uniform(keys[7], (H,), jnp.float32, -lim, lim)
    w_ih_t = jax.random.uniform(keys[8], (2 * H, G), jnp.float32, -lim, lim)
    b_ih = jax.random.uniform(keys[9], (G,), jnp.float32, -lim, lim)
    w_hh_t = jax.random.uniform(keys[10], (H, G), jnp.float32, -lim, lim)
    b_hh = jax.random.uniform(keys[11], (G,), jnp.float32, -lim, lim)

    out = gnn_forward(A, hidden, w_ein, b_ein, w_eout, b_eout, b_iah, b_oah,
                      w_ih_t, b_ih, w_hh_t, b_hh, step=step)
    out = jax.block_until_ready(out)

    # pure-JAX reference mirroring the PyTorch GNNCell (weights pre-transposed)
    def reference(A, h):
        for _ in range(step):
            eh_in = h @ w_ein + b_ein
            eh_out = h @ w_eout + b_eout
            inp_in = jnp.einsum('bnm,bmh->bnh', A[:, :, :N], eh_in) + b_iah
            inp_out = jnp.einsum('bnm,bmh->bnh', A[:, :, N:], eh_out) + b_oah
            gi = jnp.concatenate([inp_in, inp_out], axis=-1) @ w_ih_t + b_ih
            gh = h @ w_hh_t + b_hh
            i_r, i_i, i_n = jnp.split(gi, 3, axis=-1)
            h_r, h_i, h_n = jnp.split(gh, 3, axis=-1)
            rg = jax.nn.sigmoid(i_r + h_r)
            ig = jax.nn.sigmoid(i_i + h_i)
            ng = jnp.tanh(i_n + rg * h_n)
            h = ng + ig * (h - ng)
        return h

    ref = reference(A, hidden)
    assert out.shape == ref.shape
    max_err = float(jnp.max(jnp.abs(out - ref)))
    assert max_err < 1e-3, f"mismatch vs reference (max abs err {max_err})"

    print("KERNEL_OK")
</pallas_src>

<mosaic_0001>
module attributes {stable_mosaic.version = 11 : i64} {
  func.func @_gnn_kernel(%arg0: i32, %arg1: memref<2x16x32xf32, #tpu.memory_space<vmem>>, %arg2: memref<2x16x32xf32, #tpu.memory_space<vmem>>, %arg3: memref<2x16x2xf32, #tpu.memory_space<vmem>>, %arg4: memref<96x128xf32, #tpu.memory_space<vmem>>, %arg5: memref<1x128xf32, #tpu.memory_space<vmem>>, %arg6: memref<1x128xf32, #tpu.memory_space<vmem>>, %arg7: memref<1x128xf32, #tpu.memory_space<vmem>>, %arg8: memref<2x16x32xf32, #tpu.memory_space<vmem>>) attributes {dimension_semantics = [#tpu.dimension_semantics<parallel>], iteration_bounds = array<i64: 1>, scalar_prefetch = 0 : i64, scratch_operands = 0 : i64, tpu.core_type = #tpu.core_type<tc>, window_params = [{transform_indices = @transform_0, window_bounds = array<i64: 2, 16, 32>}, {transform_indices = @transform_1, window_bounds = array<i64: 2, 16, 32>}, {transform_indices = @transform_2, window_bounds = array<i64: 2, 16, 2>}, {pipeline_mode = #tpu.pipeline_mode<synchronous>, transform_indices = @transform_3, window_bounds = array<i64: 96, 128>}, {pipeline_mode = #tpu.pipeline_mode<synchronous>, transform_indices = @transform_4, window_bounds = array<i64: 1, 128>}, {pipeline_mode = #tpu.pipeline_mode<synchronous>, transform_indices = @transform_5, window_bounds = array<i64: 1, 128>}, {pipeline_mode = #tpu.pipeline_mode<synchronous>, transform_indices = @transform_6, window_bounds = array<i64: 1, 128>}, {transform_indices = @transform_7, window_bounds = array<i64: 2, 16, 32>}]} {
    %c0 = arith.constant 0 : index
    %c0_0 = arith.constant 0 : index
    %c0_1 = arith.constant 0 : index
    %0 = vector.load %arg1[%c0, %c0_0, %c0_1] : memref<2x16x32xf32, #tpu.memory_space<vmem>>, vector<2x16x32xf32>
    %c0_2 = arith.constant 0 : index
    %c0_3 = arith.constant 0 : index
    %1 = vector.load %arg4[%c0_2, %c0_3] : memref<96x128xf32, #tpu.memory_space<vmem>>, vector<96x128xf32>
    %c0_4 = arith.constant 0 : index
    %c0_5 = arith.constant 0 : index
    %c0_6 = arith.constant 0 : index
    %2 = vector.load %arg3[%c0_4, %c0_5, %c0_6] : memref<2x16x2xf32, #tpu.memory_space<vmem>>, vector<2x16x2xf32>
    %3 = vector.extract_strided_slice %2 {offsets = [0, 0, 0], sizes = [2, 16, 1], strides = [1, 1, 1]} : vector<2x16x2xf32> to vector<2x16x1xf32>
    %c0_7 = arith.constant 0 : index
    %c0_8 = arith.constant 0 : index
    %4 = vector.load %arg5[%c0_7, %c0_8] : memref<1x128xf32, #tpu.memory_space<vmem>>, vector<1x128xf32>
    %5 = vector.shape_cast %4 : vector<1x128xf32> to vector<1x1x128xf32>
    %6 = vector.broadcast %3 : vector<2x16x1xf32> to vector<2x16x128xf32>
    %7 = vector.broadcast %5 : vector<1x1x128xf32> to vector<2x16x128xf32>
    %8 = arith.mulf %6, %7 : vector<2x16x128xf32>
    %9 = vector.extract_strided_slice %2 {offsets = [0, 0, 1], sizes = [2, 16, 1], strides = [1, 1, 1]} : vector<2x16x2xf32> to vector<2x16x1xf32>
    %c0_9 = arith.constant 0 : index
    %c0_10 = arith.constant 0 : index
    %10 = vector.load %arg6[%c0_9, %c0_10] : memref<1x128xf32, #tpu.memory_space<vmem>>, vector<1x128xf32>
    %11 = vector.shape_cast %10 : vector<1x128xf32> to vector<1x1x128xf32>
    %12 = vector.broadcast %9 : vector<2x16x1xf32> to vector<2x16x128xf32>
    %13 = vector.broadcast %11 : vector<1x1x128xf32> to vector<2x16x128xf32>
    %14 = arith.mulf %12, %13 : vector<2x16x128xf32>
    %15 = arith.addf %8, %14 : vector<2x16x128xf32>
    %c0_11 = arith.constant 0 : index
    %c0_12 = arith.constant 0 : index
    %16 = vector.load %arg7[%c0_11, %c0_12] : memref<1x128xf32, #tpu.memory_space<vmem>>, vector<1x128xf32>
    %17 = vector.shape_cast %16 : vector<1x128xf32> to vector<1x1x128xf32>
    %18 = vector.broadcast %17 : vector<1x1x128xf32> to vector<2x16x128xf32>
    %19 = arith.addf %15, %18 : vector<2x16x128xf32>
    %20 = vector.shape_cast %19 : vector<2x16x128xf32> to vector<32x128xf32>
    %cst = arith.constant 0.000000e+00 : f32
    %21 = vector.broadcast %cst : f32 to vector<2x16x32xf32>
    %c0_13 = arith.constant 0 : index
    %c0_14 = arith.constant 0 : index
    %c0_15 = arith.constant 0 : index
    %22 = vector.load %arg2[%c0_13, %c0_14, %c0_15] : memref<2x16x32xf32, #tpu.memory_space<vmem>>, vector<2x16x32xf32>
    %23 = vector.shape_cast %22 : vector<2x16x32xf32> to vector<32x32xf32>
    %24 = tpu.concatenate %22, %21 in 2 : vector<2x16x32xf32>, vector<2x16x32xf32> -> vector<2x16x64xf32>
    %25 = tpu.concatenate %21, %22 in 2 : vector<2x16x32xf32>, vector<2x16x32xf32> -> vector<2x16x64xf32>
    %26 = tpu.concatenate %24, %25 in 1 : vector<2x16x64xf32>, vector<2x16x64xf32> -> vector<2x32x64xf32>
    "tpu.trace_start"() <{level = 10 : i32, message = "bnm,bmh->bnh"}> : () -> ()
    %cst_16 = arith.constant dense<0.000000e+00> : vector<2x16x64xf32>
    %27 = tpu.matmul %0, %26, %cst_16 {dimension_numbers = #tpu.dot_dimension_numbers<[2], [1], [1], [2], [0, 0, 0, 1, 1, 2], [0], [0]>} : vector<2x16x32xf32>, vector<2x32x64xf32>, vector<2x16x64xf32> -> vector<2x16x64xf32>
    "tpu.trace_stop"() : () -> ()
    %28 = tpu.concatenate %27, %22 in 2 : vector<2x16x64xf32>, vector<2x16x32xf32> -> vector<2x16x96xf32>
    %29 = vector.shape_cast %28 : vector<2x16x96xf32> to vector<32x96xf32>
    %cst_17 = arith.constant dense<0.000000e+00> : vector<32x128xf32>
    %30 = tpu.matmul %29, %1, %cst_17 {dimension_numbers = #tpu.dot_dimension_numbers<[1], [0], [0], [1], [0, 0, 1, 1], [], []>} : vector<32x96xf32>, vector<96x128xf32>, vector<32x128xf32> -> vector<32x128xf32>
    %31 = arith.addf %30, %20 : vector<32x128xf32>
    %32 = vector.extract_strided_slice %31 {offsets = [0, 0], sizes = [32, 32], strides = [1, 1]} : vector<32x128xf32> to vector<32x32xf32>
    %33 = arith.negf %32 : vector<32x32xf32>
    %34 = math.exp %33 : vector<32x32xf32>
    %cst_18 = arith.constant 1.000000e+00 : f32
    %35 = vector.broadcast %cst_18 : f32 to vector<32x32xf32>
    %36 = arith.addf %35, %34 : vector<32x32xf32>
    %37 = arith.divf %35, %36 : vector<32x32xf32>
    %38 = vector.extract_strided_slice %31 {offsets = [0, 32], sizes = [32, 32], strides = [1, 1]} : vector<32x128xf32> to vector<32x32xf32>
    %39 = arith.negf %38 : vector<32x32xf32>
    %40 = math.exp %39 : vector<32x32xf32>
    %cst_19 = arith.constant 1.000000e+00 : f32
    %41 = vector.broadcast %cst_19 : f32 to vector<32x32xf32>
    %42 = arith.addf %41, %40 : vector<32x32xf32>
    %43 = arith.divf %41, %42 : vector<32x32xf32>
    %44 = vector.extract_strided_slice %31 {offsets = [0, 64], sizes = [32, 32], strides = [1, 1]} : vector<32x128xf32> to vector<32x32xf32>
    %45 = vector.extract_strided_slice %31 {offsets = [0, 96], sizes = [32, 32], strides = [1, 1]} : vector<32x128xf32> to vector<32x32xf32>
    %46 = arith.mulf %37, %45 : vector<32x32xf32>
    %47 = arith.addf %44, %46 : vector<32x32xf32>
    %48 = math.tanh %47 : vector<32x32xf32>
    %49 = arith.subf %23, %48 : vector<32x32xf32>
    %50 = arith.mulf %43, %49 : vector<32x32xf32>
    %51 = arith.addf %48, %50 : vector<32x32xf32>
    %52 = vector.shape_cast %51 : vector<32x32xf32> to vector<2x16x32xf32>
    %53 = tpu.concatenate %52, %21 in 2 : vector<2x16x32xf32>, vector<2x16x32xf32> -> vector<2x16x64xf32>
    %54 = tpu.concatenate %21, %52 in 2 : vector<2x16x32xf32>, vector<2x16x32xf32> -> vector<2x16x64xf32>
    %55 = tpu.concatenate %53, %54 in 1 : vector<2x16x64xf32>, vector<2x16x64xf32> -> vector<2x32x64xf32>
    "tpu.trace_start"() <{level = 10 : i32, message = "bnm,bmh->bnh"}> : () -> ()
    %cst_20 = arith.constant dense<0.000000e+00> : vector<2x16x64xf32>
    %56 = tpu.matmul %0, %55, %cst_20 {dimension_numbers = #tpu.dot_dimension_numbers<[2], [1], [1], [2], [0, 0, 0, 1, 1, 2], [0], [0]>} : vector<2x16x32xf32>, vector<2x32x64xf32>, vector<2x16x64xf32> -> vector<2x16x64xf32>
    "tpu.trace_stop"() : () -> ()
    %57 = tpu.concatenate %56, %52 in 2 : vector<2x16x64xf32>, vector<2x16x32xf32> -> vector<2x16x96xf32>
    %58 = vector.shape_cast %57 : vector<2x16x96xf32> to vector<32x96xf32>
    %cst_21 = arith.constant dense<0.000000e+00> : vector<32x128xf32>
    %59 = tpu.matmul %58, %1, %cst_21 {dimension_numbers = #tpu.dot_dimension_numbers<[1], [0], [0], [1], [0, 0, 1, 1], [], []>} : vector<32x96xf32>, vector<96x128xf32>, vector<32x128xf32> -> vector<32x128xf32>
    %60 = arith.addf %59, %20 : vector<32x128xf32>
    %61 = vector.extract_strided_slice %60 {offsets = [0, 0], sizes = [32, 32], strides = [1, 1]} : vector<32x128xf32> to vector<32x32xf32>
    %62 = arith.negf %61 : vector<32x32xf32>
    %63 = math.exp %62 : vector<32x32xf32>
    %cst_22 = arith.constant 1.000000e+00 : f32
    %64 = vector.broadcast %cst_22 : f32 to vector<32x32xf32>
    %65 = arith.addf %64, %63 : vector<32x32xf32>
    %66 = arith.divf %64, %65 : vector<32x32xf32>
    %67 = vector.extract_strided_slice %60 {offsets = [0, 32], sizes = [32, 32], strides = [1, 1]} : vector<32x128xf32> to vector<32x32xf32>
    %68 = arith.negf %67 : vector<32x32xf32>
    %69 = math.exp %68 : vector<32x32xf32>
    %cst_23 = arith.constant 1.000000e+00 : f32
    %70 = vector.broadcast %cst_23 : f32 to vector<32x32xf32>
    %71 = arith.addf %70, %69 : vector<32x32xf32>
    %72 = arith.divf %70, %71 : vector<32x32xf32>
    %73 = vector.extract_strided_slice %60 {offsets = [0, 64], sizes = [32, 32], strides = [1, 1]} : vector<32x128xf32> to vector<32x32xf32>
    %74 = vector.extract_strided_slice %60 {offsets = [0, 96], sizes = [32, 32], strides = [1, 1]} : vector<32x128xf32> to vector<32x32xf32>
    %75 = arith.mulf %66, %74 : vector<32x32xf32>
    %76 = arith.addf %73, %75 : vector<32x32xf32>
    %77 = math.tanh %76 : vector<32x32xf32>
    %78 = arith.subf %51, %77 : vector<32x32xf32>
    %79 = arith.mulf %72, %78 : vector<32x32xf32>
    %80 = arith.addf %77, %79 : vector<32x32xf32>
    %81 = vector.shape_cast %80 : vector<32x32xf32> to vector<2x16x32xf32>
    %c0_24 = arith.constant 0 : index
    %c0_25 = arith.constant 0 : index
    %c0_26 = arith.constant 0 : index
    %82 = vector.load %arg8[%c0_24, %c0_25, %c0_26] : memref<2x16x32xf32, #tpu.memory_space<vmem>>, vector<2x16x32xf32>
    tpu.vector_store %arg8[%c0_24, %c0_25, %c0_26], %81 {strides = array<i32>} : memref<2x16x32xf32, #tpu.memory_space<vmem>>, vector<2x16x32xf32>,
    return
  }
  func.func @transform_0(%arg0: i32) -> (i32, i32, i32) {
    %c0_i32 = arith.constant 0 : i32
    %c0_i32_0 = arith.constant 0 : i32
    %c0_i32_1 = arith.constant 0 : i32
    return %arg0, %c0_i32, %c0_i32_0 : i32, i32, i32
  }
  func.func @transform_1(%arg0: i32) -> (i32, i32, i32) {
    %c0_i32 = arith.constant 0 : i32
    %c0_i32_0 = arith.constant 0 : i32
    %c0_i32_1 = arith.constant 0 : i32
    return %arg0, %c0_i32, %c0_i32_0 : i32, i32, i32
  }
  func.func @transform_2(%arg0: i32) -> (i32, i32, i32) {
    %c0_i32 = arith.constant 0 : i32
    %c0_i32_0 = arith.constant 0 : i32
    %c0_i32_1 = arith.constant 0 : i32
    return %arg0, %c0_i32, %c0_i32_0 : i32, i32, i32
  }
  func.func @transform_3(%arg0: i32) -> (i32, i32) {
    %c0_i32 = arith.constant 0 : i32
    %c0_i32_0 = arith.constant 0 : i32
    %c0_i32_1 = arith.constant 0 : i32
    return %c0_i32, %c0_i32_0 : i32, i32
  }
  func.func @transform_4(%arg0: i32) -> (i32, i32) {
    %c0_i32 = arith.constant 0 : i32
    %c0_i32_0 = arith.constant 0 : i32
    %c0_i32_1 = arith.constant 0 : i32
    return %c0_i32, %c0_i32_0 : i32, i32
  }
  func.func @transform_5(%arg0: i32) -> (i32, i32) {
    %c0_i32 = arith.constant 0 : i32
    %c0_i32_0 = arith.constant 0 : i32
    %c0_i32_1 = arith.constant 0 : i32
    return %c0_i32, %c0_i32_0 : i32, i32
  }
  func.func @transform_6(%arg0: i32) -> (i32, i32) {
    %c0_i32 = arith.constant 0 : i32
    %c0_i32_0 = arith.constant 0 : i32
    %c0_i32_1 = arith.constant 0 : i32
    return %c0_i32, %c0_i32_0 : i32, i32
  }
  func.func @transform_7(%arg0: i32) -> (i32, i32, i32) {
    %c0_i32 = arith.constant 0 : i32
    %c0_i32_0 = arith.constant 0 : i32
    %c0_i32_1 = arith.constant 0 : i32
    return %arg0, %c0_i32, %c0_i32_0 : i32, i32, i32
  }
}

</mosaic_0001>

<bundles_post_ra>
// kernel: tpu_custom_call.1
= control target key start
LH: loop header
LB: loop body
LE: loop exit
PB: predicated region body
PF: predicated region fallthrough
CT: control target
= control target key end

     0   :  { %12 = vsyncpa [#allocation3], 0  ;;  %s1413_s0 = inlined_call_operand.vmem [shape: f32[2,16,32], index: 0, kind: input, shape index: {}]   ;;  %s1414_s1 = inlined_call_operand.hbm [shape: f32[2,16,32], index: 1, kind: input, shape index: {}]   ;;  %s1415_s2 = inlined_call_operand.vmem [shape: f32[2,16,2], index: 2, kind: input, shape index: {}]   ;;  %s1416_s3 = inlined_call_operand.hbm [shape: f32[96,128], index: 3, kind: input, shape index: {}]   ;;  %s1417_s4 = inlined_call_operand.vmem [shape: f32[1,128], index: 4, kind: input, shape index: {}]   ;;  %s1418_s5 = inlined_call_operand.vmem [shape: f32[1,128], index: 5, kind: input, shape index: {}]   ;;  %s1419_s6 = inlined_call_operand.vmem [shape: f32[1,128], index: 6, kind: input, shape index: {}]   ;;  %s1420_s7 = inlined_call_operand.hbm [shape: f32[2,16,32], index: 7, kind: output, shape index: {}]  }
   0x1   :  { %13 = vsyncpa [#allocation6], 0 }
   0x2   :  { %14 = vsyncpa [#allocation4], 0  ;;  %s21_s26 = sshll.u32 %s1414_s1, 4  ;;  %s1007_s27 = smov [#allocation2]   ;;  %s22_s26 = int_to_ptr.hbm [resolvable:$true] %s21_s26 }
   0x3   :  { %s23_s28 = sshll.u32 %s1007_s27, 4  ;;  %s36_s8 = sshll.u32 %s1416_s3, 4  ;;  %s24_s28 = int_to_ptr.vmem [resolvable:$true] %s23_s28  ;;  %s37_s8 = int_to_ptr.hbm [resolvable:$true] %s36_s8 }
   0x4   :  { %s1008_s9 = smov 128   ;;  %s1009_s10 = smov 8  }
   0x5   :  { %29 = dma.hbm_to_vmem [thread:$0]  %s22_s26, 512, %s24_s28, [#allocation3], %s1008_s9, %s1008_s9, %s1009_s10  }
   0x6   :  { %s1010_s11 = smov [#allocation5]  }
   0x7   :  { %s38_s12 = sshll.u32 %s1010_s11, 4  ;;  %s39_s12 = int_to_ptr.vmem [resolvable:$true] %s38_s12 }
   0x8   :  { %44 = dma.hbm_to_vmem [thread:$0]  %s37_s8, 1536, %s39_s12, [#allocation6], %s1008_s9, %s1008_s9, %s1009_s10  }
   0x9   :  { %1001 = dma.done.wait [#allocation3], 512  }
   0xa   :  { %1002 = vsyncadd [#allocation3], 4294966784 }
   0xb   :  { %1003 = dma.done.wait [#allocation6], 1536  }
   0xc   :  { %1004 = vsyncadd [#allocation6], 4294965760  ;;  %v1069_v0 = vld [vmem:[#allocation2 + $0x8] sm:$0xff]  ;;  %v1071_v1 = vld [vmem:[#allocation2 + $0x18] sm:$0xff]  ;;  %s1011_s1 = smov 32   ;;  %s1012_s3 = smov 64  }
   0xd   :  { %158 = vrot.lane.b32.xlu0 %v1069_v0, %s1011_s1  ;;  %162 = vrot.lane.b32.xlu1 %v1071_v1, %s1011_s1  ;;  %v1077_v2 = vld [vmem:[#allocation2] sm:$0xff]  ;;  %v1079_v3 = vld [vmem:[#allocation2 + $0x10] sm:$0xff]  ;;  %v1093_v4 = vld [vmem:[#allocation5 + $0x58] sm:$0xff]  ;;  %vm147_vm0 = vcmask 261120   ;;  %v1013_v27 = vmov 1   ;;  %v1014_v28 = vmov 0  }
   0xe   :  { %230 = vrot.lane.b32.xlu2 %v1077_v2, %s1012_s3  ;;  %264 = vmatpush.msra.mxu2 %v1093_v4  ;;  %v1096_v5 = vld [vmem:[#allocation5 + $0x50] sm:$0xff]  ;;  %v1098_v6 = vld [vmem:[#allocation5 + $0x48] sm:$0xff]  ;;  %v1101_v7 = vld [vmem:[#allocation5 + $0x40] sm:$0xff]  ;;  %vm242_vm2 = vcmask 523264   ;;  %vm247_vm3 = vcmask 785408   ;;  %s786_s13 = sshll.u32 %s1420_s7, 4  ;;  %s787_s13 = int_to_ptr.hbm [resolvable:$true] %s786_s13 }
   0xf   :  { %v1104_v8 = vld [vmem:[#allocation5 + $0x38] sm:$0xff]  ;;  %vm1108_vm1 = vmneg %vm147_vm0  ;;  %v1113_v10 = vld [vmem:[#allocation5 + $0x30] sm:$0xff]  ;;  %872 = vset.pattern.permute.xlu1 %v1013_v27  ;;  %871 = vset.pattern.permute.xlu0 %v1014_v28 }
  0x10   :  { %265 = vmatpush.msra.mxu2 %v1096_v5  ;;  %v1119_v13 = vld [vmem:[#allocation5 + $0x28] sm:$0xff]  ;;  %v1122_v14 = vld [vmem:[#allocation5 + $0x20] sm:$0xff]  ;;  %v1125_v15 = vld [vmem:[#allocation5 + $0x18] sm:$0xff]  ;;  %870 = vset.pattern.permute.xlu2 %v1014_v28 }
  0x11   :  { %v1128_v16 = vld [vmem:[#allocation5 + $0x10] sm:$0xff]  ;;  %v1135_v19 = vld [vmem:[#allocation5 + $0x8] sm:$0xff]  ;;  %v1143_v20 = vld [vmem:[%s1413_s0] sm:$0xff] }
  0x12   :  { %266 = vmatpush.msra.mxu2 %v1098_v6  ;;  %v1150_v21 = vld [vmem:[%s1413_s0 + $0x10] sm:$0xff]  ;;  %v1166_v22 = vld [vmem:[%s1413_s0 + $0x8] sm:$0xff]  ;;  %v1171_v23 = vld [vmem:[%s1413_s0 + $0x18] sm:$0xff] }
  0x13   :  { %v1186_v24 = vld [vmem:[#allocation5] sm:$0xff]  ;;  %v78_v25 = vld [vmem:[%s1415_s2 + $0x18] sm:$0xff]  ;;  %v76_v26 = vld [vmem:[%s1415_s2 + $0x8] sm:$0xff] }
  0x14   :  { %267 = vmatpush.msra.mxu2 %v1101_v7  ;;  %v75_v29 = vld [vmem:[%s1415_s2] sm:$0xff]  ;;  %v77_v30 = vld [vmem:[%s1415_s2 + $0x10] sm:$0xff] }
  0x15   :  { %156 = vrot.lane.b32.xlu0 %v1077_v2, %s1011_s1  ;;  %160 = vrot.lane.b32.xlu1 %v1079_v3, %s1011_s1  ;;  %v878_v48 = vld [vmem:[%s1417_s4] ss:$0 sm:$0xff]  ;;  %s1015_s4 = smov 96  }
  0x16   :  { %232 = vrot.lane.b32.xlu2 %v1069_v0, %s1012_s3  ;;  %268 = vmatpush.msra.mxu2 %v1104_v8  ;;  %v879_v49 = vld [vmem:[%s1418_s5] ss:$0 sm:$0xff]  ;;  %s1016_s5 = smov [#allocation7]  }
  0x17   :  { %v880_v57 = vld [vmem:[%s1419_s6] ss:$0 sm:$0xff]  ;;  %s784_s6 = sshll.u32 %s1016_s5, 4  ;;  %s785_s6 = int_to_ptr.vmem [resolvable:$true] %s784_s6 }
  0x18   :  { %269 = vmatpush.msra.mxu2 %v1113_v10 }
  0x1a   :  { %270 = vmatpush.msra.mxu2 %v1119_v13 }
  0x1c   :  { %271 = vmatpush.msra.mxu2 %v1122_v14 }
  0x1d   :  { %234 = vrot.lane.b32.xlu0 %v1079_v3, %s1012_s3  ;;  %236 = vrot.lane.b32.xlu1 %v1071_v1, %s1012_s3 }
  0x1e   :  { %272 = vmatpush.msra.mxu2 %v1125_v15  ;;  %87 = vperm.xlu2 %870, %v76_v26  }
  0x20   :  { %273 = vmatpush.msra.mxu2 %v1128_v16 }
  0x22   :  { %274 = vmatpush.msra.mxu2 %v1135_v19 }
  0x24   :  { %275 = vmatpush.msra.mxu2 %v1186_v24 }
  0x25   :  { %97 = vperm.xlu0 %871, %v78_v25   ;;  %113 = vperm.xlu1 %872, %v76_v26  }
  0x26   :  { %873 = vset.pattern.permute.xlu2 %v1013_v27 }
  0x27   :  { %121 = vperm.xlu2 %873, %v78_v25  }
  0x2d   :  { %876 = vset.pattern.permute.xlu0 %v1013_v27  ;;  %874 = vset.pattern.permute.xlu1 %v1014_v28 }
  0x2e   :  { %109 = vperm.xlu0 %876, %v75_v29   ;;  %82 = vperm.xlu1 %874, %v75_v29  }
  0x2f   :  { %875 = vset.pattern.permute.xlu2 %v1014_v28 }
  0x30   :  { %92 = vperm.xlu2 %875, %v77_v30  }
  0x36   :  { %877 = vset.pattern.permute.xlu1 %v1013_v27 }
  0x37   :  { %117 = vperm.xlu1 %877, %v77_v30  }
  0x68   :  { %v231_v31 = vpop.permute.xlu2 %230 }
  0x70   :  { %v233_v34 = vpop.permute.xlu2 %232 }
  0x78   :  { %v88_v43 = vpop.permute.xlu2 %87 }
  0x79   :  { %v104_v51 = vmul.f32 %v878_v48, %v88_v43 }
  0x7f   :  { %v159_v11 = vpop.permute.xlu0 %158  ;;  %v163_v12 = vpop.permute.xlu1 %162 }
  0x80   :  { %801 = vmatpush.msk.msra.mxu0 %vm1108_vm1, %v159_v11  ;;  %809 = vmatpush.msk.msra.mxu1 %vm1108_vm1, %v163_v12 }
  0x81   :  { %v122_v46 = vpop.permute.xlu2 %121 }
  0x82   :  { %v130_v27 = vmul.f32 %v879_v49, %v122_v46 }
  0x87   :  { %v157_v17 = vpop.permute.xlu0 %156  ;;  %v161_v18 = vpop.permute.xlu1 %160 }
  0x88   :  { %803 = vmatpush.msk.msra.mxu0 %vm1108_vm1, %v157_v17  ;;  %811 = vmatpush.msk.msra.mxu1 %vm1108_vm1, %v161_v18 }
  0x8a   :  { %804 = vmatpush.msk.msra.mxu0 %vm147_vm0, %v1069_v0  ;;  %812 = vmatpush.msk.msra.mxu1 %vm147_vm0, %v1071_v1  ;;  %v93_v54 = vpop.permute.xlu2 %92 }
  0x8b   :  { %v105_v60 = vmul.f32 %v878_v48, %v93_v54 }
  0x8c   :  { %805 = vmatpush.msk.msra.mxu0 %vm147_vm0, %v1077_v2  ;;  %813 = vmatpush.msk.msra.mxu1 %vm147_vm0, %v1079_v3 }
  0x8d   :  { %806 = vmatmul.msk.f32.vlgmr.msra.gmra.mxu0 %vm147_vm0, %v1143_v20  ;;  %814 = vmatmul.msk.f32.vlgmr.msra.gmra.mxu1 %vm147_vm0, %v1150_v21 }
  0x8e   :  { %571 = vmatpush.msrb.mxu1 %v1093_v4 }
  0x8f   :  { %v235_v38 = vpop.permute.xlu0 %234  ;;  %v237_v40 = vpop.permute.xlu1 %236 }
  0x90   :  { %572 = vmatpush.msrb.mxu1 %v1096_v5 }
  0x92   :  { %573 = vmatpush.msrb.mxu1 %v1098_v6 }
  0x94   :  { %574 = vmatpush.msrb.mxu1 %v1101_v7 }
  0x95   :  { %807 = vmatmul.msk.f32.gmra.mxu0 %vm147_vm0, %v1166_v22  ;;  %815 = vmatmul.msk.f32.gmra.mxu1 %vm147_vm0, %v1171_v23 }
  0x96   :  { %575 = vmatpush.msrb.mxu1 %v1104_v8 }
  0x97   :  { %v114_v44 = vpop.permute.xlu1 %113  ;;  %v98_v45 = vpop.permute.xlu0 %97 }
  0x98   :  { %576 = vmatpush.msrb.mxu1 %v1113_v10  ;;  %v128_v50 = vmul.f32 %v879_v49, %v114_v44  ;;  %v106_v26 = vmul.f32 %v878_v48, %v98_v45 }
  0x9a   :  { %577 = vmatpush.msrb.mxu1 %v1119_v13  ;;  %v132_v56 = vadd.f32 %v128_v50, %v104_v51 }
  0x9c   :  { %578 = vmatpush.msrb.mxu1 %v1122_v14  ;;  %v1219_v62 = vadd.f32 %v880_v57, %v132_v56 }
  0x9e   :  { %579 = vmatpush.msrb.mxu1 %v1125_v15 }
  0xa0   :  { %580 = vmatpush.msrb.mxu1 %v1128_v16  ;;  %v83_v47 = vpop.permute.xlu1 %82  ;;  %v110_v53 = vpop.permute.xlu0 %109 }
  0xa1   :  { %v127_v58 = vmul.f32 %v879_v49, %v110_v53  ;;  %v103_v59 = vmul.f32 %v878_v48, %v83_v47 }
  0xa2   :  { %581 = vmatpush.msrb.mxu1 %v1135_v19 }
  0xa3   :  { %v131_v11 = vadd.f32 %v127_v58, %v103_v59 }
  0xa4   :  { %582 = vmatpush.msrb.mxu1 %v1186_v24 }
  0xa5   :  { %v1226_v18 = vadd.f32 %v880_v57, %v131_v11 }
  0xa9   :  { %v118_v55 = vpop.permute.xlu1 %117 }
  0xaa   :  { %v129_v61 = vmul.f32 %v879_v49, %v118_v55 }
  0xac   :  { %v133_v17 = vadd.f32 %v129_v61, %v105_v60 }
  0xae   :  { %v1228_v25 = vadd.f32 %v880_v57, %v133_v17 }
 0x10a   :  { %v195_v32 = vpop.f32.mrf.mxu0  ;;  %v224_v37 = vpop.f32.mrf.mxu1 }
 0x10b   :  { %v243_v33 = vsel %vm242_vm2, %v195_v32, %v231_v31  ;;  %v245_v39 = vsel %vm242_vm2, %v224_v37, %v235_v38  ;;  %v134_v31 = vadd.f32 %v130_v27, %v106_v26 }
 0x10c   :  { %816 = vmatmul.msk.f32.vlgmr.msra.gmra.mxu2 %vm247_vm3, %v243_v33 }
 0x10d   :  { %v1240_v32 = vadd.f32 %v880_v57, %v134_v31 }
 0x112   :  { %v198_v35 = vpop.f32.mrf.mxu0  ;;  %v227_v41 = vpop.f32.mrf.mxu1 }
 0x113   :  { %v244_v36 = vsel %vm242_vm2, %v198_v35, %v233_v34  ;;  %v246_v42 = vsel %vm242_vm2, %v227_v41, %v237_v40 }
 0x114   :  { %817 = vmatmul.msk.f32.gmra.mxu2 %vm247_vm3, %v244_v36 }
 0x11c   :  { %818 = vmatmul.msk.f32.gmra.mxu2 %vm247_vm3, %v245_v39 }
 0x124   :  { %819 = vmatmul.msk.f32.gmra.mxu2 %vm247_vm3, %v246_v42 }
 0x18f   :  { %v277_v52 = vpop.f32.mrf.mxu2 }
 0x190   :  { %v1231_v29 = vadd.f32 %v277_v52, %v1226_v18 }
 0x192   :  { %v820_v36 = vmul.f32 -1.442695, %v1231_v29 }
 0x197   :  { %v280_v63 = vpop.f32.mrf.mxu2 }
 0x198   :  { %v1222_v12 = vadd.f32 %v280_v63, %v1219_v62 }
 0x19a   :  { %371 = vrot.lane.b32.xlu2 %v1222_v12, %s1011_s1  ;;  %v821_v35 = vmul.f32 -1.442695, %v1222_v12 }
 0x19c   :  { %881 = vpow2.f32 %v821_v35 }
 0x19d   :  { %883 = vpow2.f32 %v820_v36 }
 0x19f   :  { %v283_v28 = vpop.f32.mrf.mxu2 }
 0x1a0   :  { %v1234_v30 = vadd.f32 %v283_v28, %v1228_v25 }
 0x1a2   :  { %373 = vrot.lane.b32.xlu0 %v1234_v30, %s1011_s1  ;;  %369 = vrot.lane.b32.xlu2 %v1231_v29, %s1011_s1  ;;  %v882_v37 = vpop.eup %881  ;;  %v822_v45 = vmul.f32 -1.442695, %v1234_v30 }
 0x1a3   :  { %v302_v38 = vadd.f32 1.0, %v882_v37  ;;  %v884_v39 = vpop.eup %883 }
 0x1a4   :  { %v301_v40 = vadd.f32 1.0, %v884_v39 }
 0x1a5   :  { %885 = vrcp.f32 %v302_v38  ;;  %v331_v50 = vand.u32 2147483648, %v302_v38  ;;  %vm325_vm5 = vweird.f32 %v302_v38  ;;  %v329_v52 = vand.u32 2147483647, %v302_v38 }
 0x1a6   :  { %887 = vrcp.f32 %v301_v40  ;;  %v316_v63 = vand.u32 2147483648, %v301_v40  ;;  %vm310_vm9 = vweird.f32 %v301_v40  ;;  %v314_v11 = vand.u32 2147483647, %v301_v40 }
 0x1a7   :  { %v286_v33 = vpop.f32.mrf.mxu2  ;;  %889 = vpow2.f32 %v822_v45  ;;  %v332_v56 = vor.u32 1.1754944e-38, %v331_v50  ;;  %vm330_vm7 = vcmp.eq.f32.partialorder %v329_v52, 8.507059e+37 }
 0x1a8   :  { %v1243_v34 = vadd.f32 %v286_v33, %v1240_v32  ;;  %v317_v27 = vor.u32 1.1754944e-38, %v316_v63  ;;  %vm315_vm11 = vcmp.eq.f32.partialorder %v314_v11, 8.507059e+37 }
 0x1aa   :  { %375 = vrot.lane.b32.xlu1 %v1243_v34, %s1011_s1  ;;  %v823_v51 = vmul.f32 -1.442695, %v1243_v34 }
 0x1ab   :  { %v886_v41 = vpop.eup %885 }
 0x1ac   :  { %v321_v42 = vmul.f32 %v886_v41, %v302_v38  ;;  %v888_v44 = vpop.eup %887  ;;  %vm326_vm4 = vweird.f32 %v886_v41  ;;  %891 = vpow2.f32 %v823_v51 }
 0x1ad   :  { %v306_v47 = vmul.f32 %v888_v44, %v301_v40  ;;  %vm327_vm6 = vmor %vm325_vm5, %vm326_vm4  ;;  %v890_v53 = vpop.eup %889  ;;  %vm311_vm8 = vweird.f32 %v888_v44 }
 0x1ae   :  { %v322_v43 = vsub.f32 1.0, %v321_v42  ;;  %v303_v57 = vadd.f32 1.0, %v890_v53  ;;  %vm312_vm10 = vmor %vm310_vm9, %vm311_vm8 }
 0x1af   :  { %v307_v49 = vsub.f32 1.0, %v306_v47 }
 0x1b0   :  { %v323_v46 = vmul.f32 %v886_v41, %v322_v43  ;;  %893 = vrcp.f32 %v303_v57  ;;  %vm340_vm13 = vweird.f32 %v303_v57  ;;  %v344_v45 = vand.u32 2147483647, %v303_v57 }
 0x1b1   :  { %v308_v55 = vmul.f32 %v888_v44, %v307_v49 }
 0x1b2   :  { %v324_v48 = vadd.f32 %v886_v41, %v323_v46  ;;  %v892_v17 = vpop.eup %891  ;;  %vm345_vm15 = vcmp.eq.f32.partialorder %v344_v45, 8.507059e+37 }
 0x1b3   :  { %v309_v61 = vadd.f32 %v888_v44, %v308_v55  ;;  %v304_v28 = vadd.f32 1.0, %v892_v17 }
 0x1b4   :  { %v328_v54 = vsel %vm327_vm6, %v886_v41, %v324_v48 }
 0x1b5   :  { %v1251_v59 = vsel %vm330_vm7, %v332_v56, %v328_v54  ;;  %v313_v26 = vsel %vm312_vm10, %v888_v44, %v309_v61  ;;  %895 = vrcp.f32 %v304_v28  ;;  %v346_v44 = vand.u32 2147483648, %v303_v57 }
 0x1b6   :  { %v1255_v31 = vsel %vm315_vm11, %v317_v27, %v313_v26  ;;  %v894_v36 = vpop.eup %893  ;;  %v361_v53 = vand.u32 2147483648, %v304_v28  ;;  %vm355_vm5 = vweird.f32 %v304_v28  ;;  %v359_v54 = vand.u32 2147483647, %v304_v28 }
 0x1b7   :  { %v336_v37 = vmul.f32 %v894_v36, %v303_v57  ;;  %vm341_vm12 = vweird.f32 %v894_v36  ;;  %v347_v48 = vor.u32 1.1754944e-38, %v346_v44 }
 0x1b8   :  { %vm342_vm14 = vmor %vm340_vm13, %vm341_vm12  ;;  %v362_v56 = vor.u32 1.1754944e-38, %v361_v53  ;;  %vm360_vm7 = vcmp.eq.f32.partialorder %v359_v54, 8.507059e+37 }
 0x1b9   :  { %v337_v38 = vsub.f32 1.0, %v336_v37 }
 0x1bb   :  { %v896_v39 = vpop.eup %895  ;;  %v338_v40 = vmul.f32 %v894_v36, %v337_v38 }
 0x1bc   :  { %v351_v41 = vmul.f32 %v896_v39, %v304_v28  ;;  %vm356_vm4 = vweird.f32 %v896_v39 }
 0x1bd   :  { %v339_v42 = vadd.f32 %v894_v36, %v338_v40  ;;  %vm357_vm6 = vmor %vm355_vm5, %vm356_vm4 }
 0x1be   :  { %v352_v43 = vsub.f32 1.0, %v351_v41 }
 0x1bf   :  { %v343_v46 = vsel %vm342_vm14, %v894_v36, %v339_v42 }
 0x1c0   :  { %v353_v47 = vmul.f32 %v896_v39, %v352_v43  ;;  %v348_v50 = vsel %vm345_vm15, %v347_v48, %v343_v46 }
 0x1c2   :  { %v354_v52 = vadd.f32 %v896_v39, %v353_v47 }
 0x1c4   :  { %v358_v55 = vsel %vm357_vm6, %v896_v39, %v354_v52 }
 0x1f4   :  { %v372_v58 = vpop.permute.xlu2 %371 }
 0x1f5   :  { %v382_v60 = vmul.f32 %v372_v58, %v1251_v59  ;;  %v363_v58 = vsel %vm360_vm7, %v362_v56, %v358_v55 }
 0x1f7   :  { %391 = vrot.lane.b32.xlu1 %v382_v60, %s1012_s3 }
 0x1fc   :  { %v370_v33 = vpop.permute.xlu2 %369 }
 0x1fd   :  { %v381_v35 = vmul.f32 %v370_v33, %v1255_v31 }
 0x1ff   :  { %389 = vrot.lane.b32.xlu0 %v381_v35, %s1012_s3 }
 0x214   :  { %v374_v49 = vpop.permute.xlu0 %373 }
 0x215   :  { %v383_v51 = vmul.f32 %v374_v49, %v348_v50 }
 0x217   :  { %393 = vrot.lane.b32.xlu1 %v383_v51, %s1012_s3 }
 0x21c   :  { %v376_v57 = vpop.permute.xlu1 %375 }
 0x21d   :  { %v384_v60 = vmul.f32 %v376_v57, %v363_v58 }
 0x21f   :  { %395 = vrot.lane.b32.xlu2 %v384_v60, %s1012_s3 }
 0x269   :  { %v392_v61 = vpop.permute.xlu1 %391 }
 0x26a   :  { %v402_v63 = vadd.f32 %v392_v61, %v1222_v12 }
 0x26c   :  { %897 = vtanh.f32 %v402_v63 }
 0x271   :  { %v390_v11 = vpop.permute.xlu0 %389 }
 0x272   :  { %v898_v17 = vpop.eup %897  ;;  %v401_v26 = vadd.f32 %v390_v11, %v1231_v29 }
 0x273   :  { %415 = vrot.lane.b32.xlu2 %v898_v17, %s1012_s3 }
 0x274   :  { %899 = vtanh.f32 %v401_v26 }
 0x279   :  { %v396_v27 = vpop.permute.xlu2 %395 }
 0x27a   :  { %v900_v28 = vpop.eup %899  ;;  %v404_v33 = vadd.f32 %v396_v27, %v1243_v34 }
 0x27b   :  { %413 = vrot.lane.b32.xlu1 %v900_v28, %s1012_s3 }
 0x27c   :  { %901 = vtanh.f32 %v404_v33 }
 0x282   :  { %v902_v35 = vpop.eup %901 }
 0x283   :  { %419 = vrot.lane.b32.xlu0 %v902_v35, %s1012_s3 }
 0x289   :  { %v394_v36 = vpop.permute.xlu1 %393 }
 0x28a   :  { %v403_v12 = vadd.f32 %v394_v36, %v1234_v30 }
 0x28c   :  { %903 = vtanh.f32 %v403_v12 }
 0x292   :  { %v904_v37 = vpop.eup %903 }
 0x293   :  { %417 = vrot.lane.b32.xlu2 %v904_v37, %s1012_s3 }
 0x2cd   :  { %v416_v29 = vpop.permute.xlu2 %415 }
 0x2ce   :  { %v426_v38 = vsub.f32 %v1069_v0, %v416_v29 }
 0x2d0   :  { %435 = vrot.lane.b32.xlu0 %v426_v38, %s1011_s1 }
 0x2ed   :  { %v418_v39 = vpop.permute.xlu2 %417  ;;  %v414_v34 = vpop.permute.xlu1 %413 }
 0x2ee   :  { %v427_v40 = vsub.f32 %v1079_v3, %v418_v39  ;;  %v425_v41 = vsub.f32 %v1077_v2, %v414_v34 }
 0x2f0   :  { %437 = vrot.lane.b32.xlu0 %v427_v40, %s1011_s1  ;;  %433 = vrot.lane.b32.xlu2 %v425_v41, %s1011_s1 }
 0x2f5   :  { %v420_v30 = vpop.permute.xlu0 %419 }
 0x2f6   :  { %v428_v42 = vsub.f32 %v1071_v1, %v420_v30 }
 0x2f8   :  { %439 = vrot.lane.b32.xlu1 %v428_v42, %s1011_s1 }
 0x342   :  { %v436_v43 = vpop.permute.xlu0 %435 }
 0x343   :  { %v446_v0 = vmul.f32 %v436_v43, %v1251_v59 }
 0x345   :  { %455 = vrot.lane.b32.xlu1 %v446_v0, %s1011_s1 }
 0x34a   :  { %v434_v44 = vpop.permute.xlu2 %433 }
 0x34b   :  { %v445_v45 = vmul.f32 %v434_v44, %v1255_v31 }
 0x34d   :  { %453 = vrot.lane.b32.xlu0 %v445_v45, %s1011_s1 }
 0x362   :  { %v438_v2 = vpop.permute.xlu0 %437 }
 0x363   :  { %v447_v3 = vmul.f32 %v438_v2, %v348_v50 }
 0x365   :  { %457 = vrot.lane.b32.xlu1 %v447_v3, %s1011_s1 }
 0x36a   :  { %v440_v46 = vpop.permute.xlu1 %439 }
 0x36b   :  { %v448_v47 = vmul.f32 %v440_v46, %v363_v58 }
 0x36d   :  { %459 = vrot.lane.b32.xlu2 %v448_v47, %s1011_s1 }
 0x3b7   :  { %v456_v1 = vpop.permute.xlu1 %455 }
 0x3b8   :  { %v1283_v48 = vadd.f32 %v898_v17, %v456_v1 }
 0x3ba   :  { %475 = vrot.lane.b32.xlu0 %v1283_v48, %s1012_s3  ;;  %491 = vrot.lane.b32.xlu2 %v1283_v48, %s1015_s4 }
 0x3bf   :  { %v454_v59 = vpop.permute.xlu0 %453 }
 0x3c0   :  { %v1289_v31 = vadd.f32 %v900_v28, %v454_v59 }
 0x3c2   :  { %489 = vrot.lane.b32.xlu1 %v1289_v31, %s1015_s4 }
 0x3c7   :  { %v460_v49 = vpop.permute.xlu2 %459 }
 0x3c8   :  { %v1293_v50 = vadd.f32 %v902_v35, %v460_v49 }
 0x3ca   :  { %479 = vrot.lane.b32.xlu1 %v1293_v50, %s1012_s3  ;;  %495 = vrot.lane.b32.xlu0 %v1293_v50, %s1015_s4 }
 0x3d7   :  { %v458_v51 = vpop.permute.xlu1 %457 }
 0x3d8   :  { %v1299_v52 = vadd.f32 %v904_v37, %v458_v51 }
 0x3da   :  { %477 = vrot.lane.b32.xlu0 %v1299_v52, %s1012_s3  ;;  %493 = vrot.lane.b32.xlu2 %v1299_v52, %s1015_s4 }
 0x3e2   :  { %473 = vrot.lane.b32.xlu2 %v1289_v31, %s1012_s3 }
 0x414   :  { %v492_v53 = vpop.permute.xlu2 %491 }
 0x415   :  { %825 = vmatpush.msk.msra.mxu3 %vm1108_vm1, %v492_v53 }
 0x42c   :  { %v476_v54 = vpop.permute.xlu0 %475 }
 0x434   :  { %v494_v55 = vpop.permute.xlu2 %493  ;;  %v490_v56 = vpop.permute.xlu1 %489 }
 0x435   :  { %827 = vmatpush.msk.msra.mxu3 %vm1108_vm1, %v490_v56 }
 0x437   :  { %828 = vmatpush.msk.msra.mxu3 %vm147_vm0, %v476_v54 }
 0x43c   :  { %v496_v57 = vpop.permute.xlu0 %495  ;;  %v474_v58 = vpop.permute.xlu2 %473 }
 0x43d   :  { %829 = vmatpush.msk.msra.mxu3 %vm147_vm0, %v474_v58  ;;  %833 = vmatpush.msk.msrb.mxu0 %vm1108_vm1, %v496_v57  ;;  %v480_v60 = vpop.permute.xlu1 %479 }
 0x43e   :  { %830 = vmatmul.msk.f32.vlgmr.msra.gmra.mxu3 %vm147_vm0, %v1143_v20 }
 0x43f   :  { %835 = vmatpush.msk.msrb.mxu0 %vm1108_vm1, %v494_v55  ;;  %848 = vmatpush.msrb.mxu3 %v1093_v4 }
 0x441   :  { %836 = vmatpush.msk.msrb.mxu0 %vm147_vm0, %v480_v60  ;;  %849 = vmatpush.msrb.mxu3 %v1096_v5 }
 0x443   :  { %850 = vmatpush.msrb.mxu3 %v1098_v6 }
 0x445   :  { %851 = vmatpush.msrb.mxu3 %v1101_v7 }
 0x446   :  { %831 = vmatmul.msk.f32.gmra.mxu3 %vm147_vm0, %v1166_v22 }
 0x447   :  { %852 = vmatpush.msrb.mxu3 %v1104_v8 }
 0x449   :  { %853 = vmatpush.msrb.mxu3 %v1113_v10 }
 0x44b   :  { %854 = vmatpush.msrb.mxu3 %v1119_v13 }
 0x44c   :  { %v478_v9 = vpop.permute.xlu0 %477 }
 0x44d   :  { %837 = vmatpush.msk.msrb.mxu0 %vm147_vm0, %v478_v9  ;;  %855 = vmatpush.msrb.mxu3 %v1122_v14 }
 0x44e   :  { %838 = vmatmul.msk.f32.vlgmr.msrb.gmra.mxu0 %vm147_vm0, %v1150_v21 }
 0x44f   :  { %856 = vmatpush.msrb.mxu3 %v1125_v15 }
 0x451   :  { %857 = vmatpush.msrb.mxu3 %v1128_v16 }
 0x453   :  { %858 = vmatpush.msrb.mxu3 %v1135_v19 }
 0x455   :  { %859 = vmatpush.msrb.mxu3 %v1186_v24 }
 0x456   :  { %839 = vmatmul.msk.f32.gmra.mxu0 %vm147_vm0, %v1171_v23 }
 0x4c1   :  { %v522_v4 = vpop.f32.mrf.mxu3 }
 0x4c2   :  { %v551_v5 = vsel %vm242_vm2, %v522_v4, %v1289_v31 }
 0x4c3   :  { %840 = vmatmul.msk.f32.vlgmr.msrb.gmra.mxu1 %vm247_vm3, %v551_v5 }
 0x4c9   :  { %v525_v6 = vpop.f32.mrf.mxu3 }
 0x4ca   :  { %v552_v7 = vsel %vm242_vm2, %v525_v6, %v1283_v48 }
 0x4cb   :  { %v545_v8 = vpop.f32.mrf.mxu0  ;;  %841 = vmatmul.msk.f32.gmra.mxu1 %vm247_vm3, %v552_v7 }
 0x4cc   :  { %v553_v10 = vsel %vm242_vm2, %v545_v8, %v1299_v52 }
 0x4cd   :  { %842 = vmatmul.msk.f32.vlgmr.msrb.gmra.mxu3 %vm247_vm3, %v553_v10 }
 0x4d3   :  { %v548_v13 = vpop.f32.mrf.mxu0 }
 0x4d4   :  { %v554_v14 = vsel %vm242_vm2, %v548_v13, %v1293_v50 }
 0x4d5   :  { %843 = vmatmul.msk.f32.gmra.mxu3 %vm247_vm3, %v554_v14 }
 0x540   :  { %v584_v15 = vpop.f32.mrf.mxu1 }
 0x541   :  { %v1352_v16 = vadd.f32 %v584_v15, %v1226_v18 }
 0x543   :  { %676 = vrot.lane.b32.xlu1 %v1352_v16, %s1011_s1  ;;  %v844_v63 = vmul.f32 -1.442695, %v1352_v16 }
 0x548   :  { %v587_v19 = vpop.f32.mrf.mxu1 }
 0x549   :  { %v1357_v20 = vadd.f32 %v587_v19, %v1219_v62 }
 0x54b   :  { %678 = vrot.lane.b32.xlu2 %v1357_v20, %s1011_s1  ;;  %v845_v62 = vmul.f32 -1.442695, %v1357_v20 }
 0x54d   :  { %905 = vpow2.f32 %v845_v62 }
 0x550   :  { %v590_v21 = vpop.f32.mrf.mxu3 }
 0x551   :  { %v1362_v22 = vadd.f32 %v590_v21, %v1228_v25 }
 0x553   :  { %680 = vrot.lane.b32.xlu0 %v1362_v22, %s1011_s1  ;;  %v906_v18 = vpop.eup %905 }
 0x554   :  { %v609_v61 = vadd.f32 1.0, %v906_v18 }
 0x556   :  { %907 = vrcp.f32 %v609_v61  ;;  %v638_v36 = vand.u32 2147483648, %v609_v61  ;;  %vm632_vm2 = vweird.f32 %v609_v61  ;;  %v636_v37 = vand.u32 2147483647, %v609_v61 }
 0x557   :  { %909 = vpow2.f32 %v844_v63 }
 0x558   :  { %v593_v23 = vpop.f32.mrf.mxu3  ;;  %v639_v34 = vor.u32 1.1754944e-38, %v638_v36  ;;  %vm637_vm8 = vcmp.eq.f32.partialorder %v636_v37, 8.507059e+37 }
 0x559   :  { %v1367_v24 = vadd.f32 %v593_v23, %v1240_v32  ;;  %v846_v32 = vmul.f32 -1.442695, %v1362_v22 }
 0x55b   :  { %682 = vrot.lane.b32.xlu1 %v1367_v24, %s1011_s1  ;;  %v847_v12 = vmul.f32 -1.442695, %v1367_v24 }
 0x55c   :  { %v908_v25 = vpop.eup %907 }
 0x55d   :  { %v910_v11 = vpop.eup %909  ;;  %v628_v17 = vmul.f32 %v908_v25, %v609_v61  ;;  %vm633_vm1 = vweird.f32 %v908_v25 }
 0x55e   :  { %v608_v26 = vadd.f32 1.0, %v910_v11  ;;  %vm634_vm3 = vmor %vm632_vm2, %vm633_vm1 }
 0x55f   :  { %v629_v27 = vsub.f32 1.0, %v628_v17 }
 0x560   :  { %911 = vrcp.f32 %v608_v26  ;;  %v623_v46 = vand.u32 2147483648, %v608_v26  ;;  %vm617_vm10 = vweird.f32 %v608_v26  ;;  %v621_v47 = vand.u32 2147483647, %v608_v26 }
 0x561   :  { %v630_v28 = vmul.f32 %v908_v25, %v629_v27  ;;  %913 = vpow2.f32 %v846_v32 }
 0x562   :  { %915 = vpow2.f32 %v847_v12  ;;  %v624_v49 = vor.u32 1.1754944e-38, %v623_v46  ;;  %vm622_vm12 = vcmp.eq.f32.partialorder %v621_v47, 8.507059e+37 }
 0x563   :  { %v631_v33 = vadd.f32 %v908_v25, %v630_v28 }
 0x565   :  { %v635_v38 = vsel %vm634_vm3, %v908_v25, %v631_v33 }
 0x566   :  { %v912_v35 = vpop.eup %911  ;;  %v1375_v30 = vsel %vm637_vm8, %v639_v34, %v635_v38 }
 0x567   :  { %v914_v29 = vpop.eup %913  ;;  %v613_v39 = vmul.f32 %v912_v35, %v608_v26  ;;  %vm618_vm9 = vweird.f32 %v912_v35 }
 0x568   :  { %v610_v40 = vadd.f32 1.0, %v914_v29  ;;  %v916_v0 = vpop.eup %915  ;;  %vm619_vm11 = vmor %vm617_vm10, %vm618_vm9 }
 0x569   :  { %v614_v43 = vsub.f32 1.0, %v613_v39  ;;  %v611_v45 = vadd.f32 1.0, %v916_v0 }
 0x56a   :  { %917 = vrcp.f32 %v610_v40  ;;  %v653_v4 = vand.u32 2147483648, %v610_v40  ;;  %vm647_vm14 = vweird.f32 %v610_v40  ;;  %v651_v5 = vand.u32 2147483647, %v610_v40 }
 0x56b   :  { %v615_v44 = vmul.f32 %v912_v35, %v614_v43  ;;  %919 = vrcp.f32 %v611_v45  ;;  %v668_v19 = vand.u32 2147483648, %v611_v45  ;;  %vm662_vm6 = vweird.f32 %v611_v45 }
 0x56c   :  { %v654_v8 = vor.u32 1.1754944e-38, %v653_v4  ;;  %vm652_vm4 = vcmp.eq.f32.partialorder %v651_v5, 8.507059e+37  ;;  %v666_v21 = vand.u32 2147483647, %v611_v45 }
 0x56d   :  { %v616_v2 = vadd.f32 %v912_v35, %v615_v44  ;;  %v669_v62 = vor.u32 1.1754944e-38, %v668_v19 }
 0x56e   :  { %vm667_vm1 = vcmp.eq.f32.partialorder %v666_v21, 8.507059e+37 }
 0x56f   :  { %v620_v1 = vsel %vm619_vm11, %v912_v35, %v616_v2 }
 0x570   :  { %v918_v3 = vpop.eup %917  ;;  %v625_v51 = vsel %vm622_vm12, %v624_v49, %v620_v1 }
 0x571   :  { %v643_v59 = vmul.f32 %v918_v3, %v610_v40  ;;  %v920_v56 = vpop.eup %919  ;;  %vm648_vm13 = vweird.f32 %v918_v3 }
 0x572   :  { %v658_v58 = vmul.f32 %v920_v56, %v611_v45  ;;  %vm649_vm15 = vmor %vm647_vm14, %vm648_vm13  ;;  %vm663_vm5 = vweird.f32 %v920_v56 }
 0x573   :  { %v644_v55 = vsub.f32 1.0, %v643_v59  ;;  %vm664_vm7 = vmor %vm662_vm6, %vm663_vm5 }
 0x574   :  { %v659_v9 = vsub.f32 1.0, %v658_v58 }
 0x575   :  { %v645_v57 = vmul.f32 %v918_v3, %v644_v55 }
 0x576   :  { %v660_v7 = vmul.f32 %v920_v56, %v659_v9 }
 0x577   :  { %v646_v60 = vadd.f32 %v918_v3, %v645_v57 }
 0x578   :  { %v661_v15 = vadd.f32 %v920_v56, %v660_v7 }
 0x579   :  { %v650_v6 = vsel %vm649_vm15, %v918_v3, %v646_v60 }
 0x57a   :  { %v655_v13 = vsel %vm652_vm4, %v654_v8, %v650_v6  ;;  %v665_v23 = vsel %vm664_vm7, %v920_v56, %v661_v15 }
 0x57b   :  { %v670_v18 = vsel %vm667_vm1, %v669_v62, %v665_v23 }
 0x5a5   :  { %v679_v41 = vpop.permute.xlu2 %678 }
 0x5a6   :  { %v689_v42 = vmul.f32 %v679_v41, %v1375_v30 }
 0x5a8   :  { %698 = vrot.lane.b32.xlu0 %v689_v42, %s1012_s3 }
 0x5b5   :  { %v677_v53 = vpop.permute.xlu1 %676 }
 0x5b6   :  { %v688_v54 = vmul.f32 %v677_v53, %v625_v51 }
 0x5b8   :  { %696 = vrot.lane.b32.xlu2 %v688_v54, %s1012_s3 }
 0x5c5   :  { %v681_v10 = vpop.permute.xlu0 %680 }
 0x5c6   :  { %v690_v14 = vmul.f32 %v681_v10, %v655_v13 }
 0x5c8   :  { %700 = vrot.lane.b32.xlu1 %v690_v14, %s1012_s3 }
 0x5cd   :  { %v683_v61 = vpop.permute.xlu1 %682 }
 0x5ce   :  { %v691_v63 = vmul.f32 %v683_v61, %v670_v18 }
 0x5d0   :  { %702 = vrot.lane.b32.xlu2 %v691_v63, %s1012_s3 }
 0x612   :  { %v697_v25 = vpop.permute.xlu2 %696 }
 0x613   :  { %v708_v11 = vadd.f32 %v697_v25, %v1352_v16 }
 0x615   :  { %921 = vtanh.f32 %v708_v11 }
 0x61a   :  { %v699_v17 = vpop.permute.xlu0 %698 }
 0x61b   :  { %v922_v26 = vpop.eup %921  ;;  %v709_v27 = vadd.f32 %v699_v17, %v1357_v20 }
 0x61c   :  { %v716_v32 = vsub.f32 %v1289_v31, %v922_v26 }
 0x61d   :  { %923 = vtanh.f32 %v709_v27 }
 0x61e   :  { %724 = vrot.lane.b32.xlu0 %v716_v32, %s1015_s4 }
 0x623   :  { %v924_v28 = vpop.eup %923 }
 0x624   :  { %v717_v33 = vsub.f32 %v1283_v48, %v924_v28 }
 0x626   :  { %726 = vrot.lane.b32.xlu1 %v717_v33, %s1015_s4 }
 0x62a   :  { %v703_v35 = vpop.permute.xlu2 %702 }
 0x62b   :  { %v711_v36 = vadd.f32 %v703_v35, %v1367_v24 }
 0x62d   :  { %925 = vtanh.f32 %v711_v36 }
 0x633   :  { %v926_v16 = vpop.eup %925 }
 0x634   :  { %v719_v12 = vsub.f32 %v1293_v50, %v926_v16 }
 0x636   :  { %730 = vrot.lane.b32.xlu0 %v719_v12, %s1015_s4 }
 0x63a   :  { %v701_v20 = vpop.permute.xlu1 %700 }
 0x63b   :  { %v710_v31 = vadd.f32 %v701_v20, %v1362_v22 }
 0x63d   :  { %927 = vtanh.f32 %v710_v31 }
 0x643   :  { %v928_v37 = vpop.eup %927 }
 0x644   :  { %v718_v29 = vsub.f32 %v1299_v52, %v928_v37 }
 0x646   :  { %728 = vrot.lane.b32.xlu2 %v718_v29, %s1015_s4 }
 0x690   :  { %v725_v48 = vpop.permute.xlu0 %724 }
 0x691   :  { %v736_v38 = vmul.f32 %v725_v48, %v625_v51 }
 0x693   :  { %744 = vrot.lane.b32.xlu1 %v736_v38, %s1011_s1 }
 0x698   :  { %v727_v24 = vpop.permute.xlu1 %726 }
 0x699   :  { %v737_v39 = vmul.f32 %v727_v24, %v1375_v30 }
 0x69b   :  { %746 = vrot.lane.b32.xlu2 %v737_v39, %s1011_s1 }
 0x6a0   :  { %v729_v50 = vpop.permute.xlu2 %728 }
 0x6a1   :  { %v738_v34 = vmul.f32 %v729_v50, %v655_v13 }
 0x6a3   :  { %748 = vrot.lane.b32.xlu0 %v738_v34, %s1011_s1 }
 0x6a8   :  { %v731_v22 = vpop.permute.xlu0 %730 }
 0x6a9   :  { %v739_v40 = vmul.f32 %v731_v22, %v670_v18 }
 0x6ab   :  { %750 = vrot.lane.b32.xlu1 %v739_v40, %s1011_s1 }
 0x6f5   :  { %v747_v52 = vpop.permute.xlu2 %746 }
 0x6f6   :  { %v757_v41 = vadd.f32 %v924_v28, %v747_v52 }
 0x6f8   :  { %766 = vrot.lane.b32.xlu0 %v757_v41, %s1012_s3 }
 0x705   :  { %v745_v42 = vpop.permute.xlu1 %744 }
 0x706   :  { %v756_v43 = vadd.f32 %v922_v26, %v745_v42 }
 0x708   :  { %764 = vrot.lane.b32.xlu2 %v756_v43, %s1012_s3 }
 0x715   :  { %v749_v0 = vpop.permute.xlu0 %748 }
 0x716   :  { %v758_v30 = vadd.f32 %v928_v37, %v749_v0 }
 0x718   :  { %768 = vrot.lane.b32.xlu1 %v758_v30, %s1012_s3 }
 0x71d   :  { %v751_v44 = vpop.permute.xlu1 %750 }
 0x71e   :  { %v759_v45 = vadd.f32 %v926_v16, %v751_v44 }
 0x720   :  { %770 = vrot.lane.b32.xlu2 %v759_v45, %s1012_s3 }
 0x762   :  { %v765_v2 = vpop.permute.xlu2 %764 }
 0x763   :  { %776 = vst.msk [vmem:[#allocation7] sm:$0xff] %vm147_vm0, %v765_v2 }
 0x76a   :  { %v767_v3 = vpop.permute.xlu0 %766 }
 0x76b   :  { %777 = vst.msk [vmem:[#allocation7 + $0x8] sm:$0xff] %vm147_vm0, %v767_v3 }
 0x77a   :  { %v771_v46 = vpop.permute.xlu2 %770 }
 0x77b   :  { %779 = vst.msk [vmem:[#allocation7 + $0x18] sm:$0xff] %vm147_vm0, %v771_v46 }
 0x78a   :  { %v769_v47 = vpop.permute.xlu1 %768 }
 0x78b   :  { %778 = vst.msk [vmem:[#allocation7 + $0x10] sm:$0xff] %vm147_vm0, %v769_v47 }
 0x78c   :  { %792 = dma.vmem_to_hbm [thread:$0]  %s785_s6, 512, %s787_s13, [#allocation4], %s1008_s9, %s1008_s9, %s1009_s10  }
 0x78d   :  { %1005 = dma.done.wait [#allocation4], 512  }
 0x78e   :  { %1006 = vsyncadd [#allocation4], 4294966784 }
 0x78f   :  { %797 = vsyncpa [#allocation3], 1 }
 0x790   :  { %798 = vsyncpa [#allocation6], 1 }
 0x791   :  { %799 = vsyncpa [#allocation4], 1 }

</bundles_post_ra>
